<compile_context>
chip_gen: v6e
topology: v6e:2x2x1
jax: 0.10.0
libtpu: 0.0.40
codegen_flags: <defaults>
</compile_context>

<pallas_src>
import functools

import jax
import jax.numpy as jnp
from jax import lax
from jax.experimental import pallas as pl
from jax.experimental.pallas import tpu as pltpu


def _round_up(x: int, m: int) -> int:
    return (x + m - 1) // m * m


def _kmer_count_kernel(tok_ref, msk_ref, o_ref, kmer_ref, *, k, base,
                       vocab_pad, chunk, log_counts, binary):
    """One (batch_tile, window_chunk) grid step.

    tok_ref:  (TB, L_pad)     int32 tokens in [0, base), resident across chunks
    msk_ref:  (TB, L_pad)     int32 per-token validity (1 = valid)
    o_ref:    (TB, vocab_pad) f32 counts, resident accumulator across chunks
    kmer_ref: (TB, W_pad)     int32 scratch: k-mer id per window, with invalid
                              windows replaced by the sentinel `vocab_pad`
    """
    TB, _ = tok_ref.shape
    W_pad = kmer_ref.shape[1]
    c = pl.program_id(1)

    @pl.when(c == 0)
    def _init():
        # Zero the resident output block and build the folded k-mer ids once
        # per batch tile (O(TB*W*k), negligible next to the histogram).
        o_ref[...] = jnp.zeros_like(o_ref)
        toks = tok_ref[...]
        msk = msk_ref[...]
        km = jnp.zeros((TB, W_pad), dtype=jnp.int32)
        vd = jnp.ones((TB, W_pad), dtype=jnp.int32)
        # TODO(synk): digit ordering (MSB-first Horner) assumed to match
        # torchmers' count_k_mers; a mismatch only permutes the output bins.
        for j in range(k):
            km = km * base + toks[:, j:j + W_pad]
            vd = vd * msk[:, j:j + W_pad]
        # Sentinel vocab_pad never matches any bin in [0, vocab_pad).
        kmer_ref[...] = jnp.where(vd > 0, km, jnp.int32(vocab_pad))

    # Lane-aligned chunk of precomputed k-mer ids.
    w0 = pl.multiple_of(c * chunk, 128)
    km_c = kmer_ref[:, pl.ds(w0, chunk)]                         # (TB, chunk)

    # Histogram chunk: compare against a tiny broadcastable bin iota, then push
    # the window-axis reduction onto the MXU (bf16 0/1 one-hot, f32 accum).
    bins = lax.broadcasted_iota(jnp.int32, (1, 1, vocab_pad), 2)
    onehot = (km_c[:, :, None] == bins).astype(jnp.bfloat16)     # (TB, chunk, V)
    ones_row = jnp.ones((TB, 1, chunk), dtype=jnp.bfloat16)
    part = jnp.einsum('bqw,bwv->bqv', ones_row, onehot,
                      preferred_element_type=jnp.float32)        # (TB, 1, V)
    o_ref[...] += part[:, 0, :]

    @pl.when(c == pl.num_programs(1) - 1)
    def _finalize():
        if log_counts:
            o_ref[...] = jnp.log(o_ref[...] + 1.0)
        if binary:
            o_ref[...] = (o_ref[...] > 0).astype(jnp.float32)


def kmer_frequency_encoder(tokens, *, k, base=4, binary=False,
                           log_counts=False, mask=None, seq_lens=None,
                           batch_tile=None, window_chunk=None):
    """JAX/Pallas equivalent of KMerFrequencyEncoder.forward (one fused kernel).

    tokens:   (B, L) integer-encoded sequence, values in [0, base)
    mask:     optional (B, L) bool/int, 1/True = valid token
              # TODO(synk): assumes 1/True marks VALID tokens (flip if torchmers
              # uses the opposite polarity for padding_mask).
    seq_lens: optional (B,) int valid-prefix lengths (used if mask is None)
    returns:  (B, base**k) float32 counts (log1p'd / binarized per flags)
    """
    assert k > 0, f"k must be positive, but found {k}"
    assert not (binary and log_counts), \
        "binary and log_counts options are mutually exclusive."
    B, L = tokens.shape
    assert L >= k, "sequence length must be >= k"
    vocab = base ** k
    vocab_pad = _round_up(vocab, 128)            # lane-dense output block
    W = L - k + 1

    tokens = tokens.astype(jnp.int32)

    # Batch tile: multiple of 8; for small B aim for >=2 grid steps (v7x has
    # two TensorCores); for large B keep TB modest so chunk intermediates fit
    # comfortably in scoped VMEM on all generations.
    if batch_tile is not None:
        TB = batch_tile
    elif B >= 128:
        TB = 64
    else:
        TB = max(8, _round_up((B + 1) // 2, 8))
    B_pad = _round_up(B, TB)

    # Window chunk: multiple of 128, sized so the bf16 one-hot stays ~<= 4 MiB.
    if window_chunk is None:
        budget = 4 * 1024 * 1024
        window_chunk = max(128, (budget // (TB * vocab_pad * 2)) // 128 * 128)
    window_chunk = min(window_chunk, _round_up(W, 128))
    num_chunks = pl.cdiv(W, window_chunk)
    W_pad = num_chunks * window_chunk
    L_pad = W_pad + k - 1

    # Unify padding_mask / seq_lens into one per-token validity map.
    if mask is not None:
        tok_valid = mask.astype(jnp.int32)
    elif seq_lens is not None:
        pos = lax.broadcasted_iota(jnp.int32, (B, L), 1)
        tok_valid = (pos < seq_lens.astype(jnp.int32)[:, None]).astype(jnp.int32)
    else:
        tok_valid = jnp.ones((B, L), dtype=jnp.int32)

    # Pad batch and sequence; padded positions are invalid (validity 0), so all
    # windows touching padding land on the sentinel bin and are never counted.
    tokens = jnp.pad(tokens, ((0, B_pad - B), (0, L_pad - L)))
    tok_valid = jnp.pad(tok_valid, ((0, B_pad - B), (0, L_pad - L)))

    cost = pl.CostEstimate(
        flops=2 * B_pad * W_pad * vocab_pad + 2 * B_pad * W_pad * k,
        transcendentals=B_pad * vocab_pad if log_counts else 0,
        bytes_accessed=2 * B_pad * L_pad * 4 + B_pad * vocab_pad * 4,
    )

    kernel = functools.partial(
        _kmer_count_kernel, k=k, base=base, vocab_pad=vocab_pad,
        chunk=window_chunk, log_counts=log_counts, binary=binary)

    counts_pad = pl.pallas_call(
        kernel,
        out_shape=jax.ShapeDtypeStruct((B_pad, vocab_pad), jnp.float32),
        grid_spec=pltpu.PrefetchScalarGridSpec(
            num_scalar_prefetch=0,
            grid=(B_pad // TB, num_chunks),
            in_specs=[
                pl.BlockSpec((TB, L_pad), lambda i, c: (i, 0)),   # resident
                pl.BlockSpec((TB, L_pad), lambda i, c: (i, 0)),   # resident
            ],
            out_specs=pl.BlockSpec((TB, vocab_pad), lambda i, c: (i, 0)),
            scratch_shapes=[pltpu.VMEM((TB, W_pad), jnp.int32)],
        ),
        compiler_params=pltpu.CompilerParams(
            dimension_semantics=("parallel", "arbitrary"),
            vmem_limit_bytes=32 * 1024 * 1024),
        cost_estimate=cost,
    )(tokens, tok_valid)

    # Strip batch padding and lane-padding bins (always zero).
    return counts_pad[:B, :vocab]


def ref_kmer_counts(tokens, *, k, base, mask=None, seq_lens=None,
                    binary=False, log_counts=False):
    """Pure-JAX reference (same semantics, no Pallas)."""
    B, L = tokens.shape
    W = L - k + 1
    vocab = base ** k
    tokens = tokens.astype(jnp.int32)
    if mask is not None:
        tv = mask.astype(jnp.int32)
    elif seq_lens is not None:
        tv = (jnp.arange(L)[None, :] < seq_lens[:, None]).astype(jnp.int32)
    else:
        tv = jnp.ones((B, L), jnp.int32)
    kmer = jnp.zeros((B, W), jnp.int32)
    valid = jnp.ones((B, W), jnp.int32)
    for j in range(k):
        kmer = kmer * base + tokens[:, j:j + W]
        valid = valid * tv[:, j:j + W]
    hit = (kmer[:, :, None] == jnp.arange(vocab)[None, None, :]) & (valid[:, :, None] > 0)
    counts = hit.astype(jnp.float32).sum(axis=1)
    if log_counts:
        counts = jnp.log(counts + 1.0)
    if binary:
        counts = (counts > 0).astype(jnp.float32)
    return counts


if __name__ == "__main__":
    # Small shapes consistent with the module: integer-encoded DNA-like input.
    batch = 8
    seq_len = 32
    k = 3
    base = 4            # module default -> vocab = 64 (padded to 128 lanes)

    key = jax.random.PRNGKey(0)
    k_tok, k_len, k_tok2 = jax.random.split(key, 3)
    tokens = jax.random.randint(k_tok, (batch, seq_len), 0, base, dtype=jnp.int32)
    seq_lens = jax.random.randint(k_len, (batch,), k, seq_len + 1, dtype=jnp.int32)

    # Default encoder (raw counts) with seq_lens masking.
    out = jax.block_until_ready(
        kmer_frequency_encoder(tokens, k=k, base=base, seq_lens=seq_lens))
    assert out.shape == (batch, base ** k)
    ref = ref_kmer_counts(tokens, k=k, base=base, seq_lens=seq_lens)
    assert jnp.array_equal(out, ref)                      # integer counts: exact
    # Independent sanity check: total count per row == number of valid windows.
    expected_windows = jnp.maximum(seq_lens - (k - 1), 0).astype(jnp.float32)
    assert jnp.allclose(out.sum(axis=1), expected_windows)

    # No-mask variant (every window valid).
    out_all = jax.block_until_ready(kmer_frequency_encoder(tokens, k=k, base=base))
    assert jnp.array_equal(out_all, ref_kmer_counts(tokens, k=k, base=base))

    # log_counts variant.
    out_log = jax.block_until_ready(
        kmer_frequency_encoder(tokens, k=k, base=base, seq_lens=seq_lens,
                               log_counts=True))
    assert jnp.allclose(out_log, jnp.log(ref + 1.0), atol=1e-6, rtol=1e-6)

    # binary variant.
    out_bin = jax.block_until_ready(
        kmer_frequency_encoder(tokens, k=k, base=base, seq_lens=seq_lens,
                               binary=True))
    assert jnp.array_equal(out_bin, (ref > 0).astype(jnp.float32))

    # Batch not a multiple of the tile: exercises batch padding + 2 grid steps.
    tokens2 = jax.random.randint(k_tok2, (12, seq_len), 0, base, dtype=jnp.int32)
    out2 = jax.block_until_ready(kmer_frequency_encoder(tokens2, k=k, base=base))
    assert jnp.array_equal(out2, ref_kmer_counts(tokens2, k=k, base=base))

    print("KERNEL_OK")
</pallas_src>

<mosaic_0001>
module attributes {stable_mosaic.version = 11 : i64} {
  func.func @_kmer_count_kernel(%arg0: i32, %arg1: i32, %arg2: memref<8x130xi32, #tpu.memory_space<vmem>>, %arg3: memref<8x130xi32, #tpu.memory_space<vmem>>, %arg4: memref<8x128xf32, #tpu.memory_space<vmem>>, %arg5: memref<8x128xi32, #tpu.memory_space<vmem>>) attributes {dimension_semantics = [#tpu.dimension_semantics<parallel>, #tpu.dimension_semantics<arbitrary>], iteration_bounds = array<i64: 1, 1>, scalar_prefetch = 0 : i64, scratch_operands = 1 : i64, tpu.core_type = #tpu.core_type<tc>, window_params = [{transform_indices = @transform_0, window_bounds = array<i64: 8, 130>}, {transform_indices = @transform_1, window_bounds = array<i64: 8, 130>}, {transform_indices = @transform_2, window_bounds = array<i64: 8, 128>}]} {
    %c0_i32 = arith.constant 0 : i32
    %0 = arith.cmpi eq, %arg1, %c0_i32 : i32
    %1 = arith.extui %0 : i1 to i32
    %c0_i32_0 = arith.constant 0 : i32
    %2 = arith.cmpi ne, %1, %c0_i32_0 : i32
    scf.if %2 {
      %cst_6 = arith.constant 0.000000e+00 : f32
      %21 = vector.broadcast %cst_6 : f32 to vector<8x128xf32>
      %c0_7 = arith.constant 0 : index
      %c0_8 = arith.constant 0 : index
      %22 = vector.load %arg4[%c0_7, %c0_8] : memref<8x128xf32, #tpu.memory_space<vmem>>, vector<8x128xf32>
      tpu.vector_store %arg4[%c0_7, %c0_8], %21 {strides = array<i32>} : memref<8x128xf32, #tpu.memory_space<vmem>>, vector<8x128xf32>,
      %c0_9 = arith.constant 0 : index
      %c0_10 = arith.constant 0 : index
      %23 = vector.load %arg2[%c0_9, %c0_10] : memref<8x130xi32, #tpu.memory_space<vmem>>, vector<8x130xi32>
      %c0_11 = arith.constant 0 : index
      %c0_12 = arith.constant 0 : index
      %24 = vector.load %arg3[%c0_11, %c0_12] : memref<8x130xi32, #tpu.memory_space<vmem>>, vector<8x130xi32>
      %c0_i32_13 = arith.constant 0 : i32
      %25 = vector.broadcast %c0_i32_13 : i32 to vector<8x128xi32>
      %c1_i32 = arith.constant 1 : i32
      %26 = vector.broadcast %c1_i32 : i32 to vector<8x128xi32>
      %c4_i32 = arith.constant 4 : i32
      %27 = vector.broadcast %c4_i32 : i32 to vector<8x128xi32>
      %28 = arith.muli %25, %27 : vector<8x128xi32>
      %29 = vector.extract_strided_slice %23 {offsets = [0, 0], sizes = [8, 128], strides = [1, 1]} : vector<8x130xi32> to vector<8x128xi32>
      %30 = arith.addi %28, %29 : vector<8x128xi32>
      %31 = vector.extract_strided_slice %24 {offsets = [0, 0], sizes = [8, 128], strides = [1, 1]} : vector<8x130xi32> to vector<8x128xi32>
      %32 = arith.muli %26, %31 : vector<8x128xi32>
      %c4_i32_14 = arith.constant 4 : i32
      %33 = vector.broadcast %c4_i32_14 : i32 to vector<8x128xi32>
      %34 = arith.muli %30, %33 : vector<8x128xi32>
      %35 = vector.extract_strided_slice %23 {offsets = [0, 1], sizes = [8, 128], strides = [1, 1]} : vector<8x130xi32> to vector<8x128xi32>
      %36 = arith.addi %34, %35 : vector<8x128xi32>
      %37 = vector.extract_strided_slice %24 {offsets = [0, 1], sizes = [8, 128], strides = [1, 1]} : vector<8x130xi32> to vector<8x128xi32>
      %38 = arith.muli %32, %37 : vector<8x128xi32>
      %c4_i32_15 = arith.constant 4 : i32
      %39 = vector.broadcast %c4_i32_15 : i32 to vector<8x128xi32>
      %40 = arith.muli %36, %39 : vector<8x128xi32>
      %41 = vector.extract_strided_slice %23 {offsets = [0, 2], sizes = [8, 128], strides = [1, 1]} : vector<8x130xi32> to vector<8x128xi32>
      %42 = arith.addi %40, %41 : vector<8x128xi32>
      %43 = vector.extract_strided_slice %24 {offsets = [0, 2], sizes = [8, 128], strides = [1, 1]} : vector<8x130xi32> to vector<8x128xi32>
      %44 = arith.muli %38, %43 : vector<8x128xi32>
      %c0_i32_16 = arith.constant 0 : i32
      %45 = vector.broadcast %c0_i32_16 : i32 to vector<8x128xi32>
      %46 = arith.cmpi sgt, %44, %45 : vector<8x128xi32>
      %c128_i32_17 = arith.constant 128 : i32
      %47 = vector.broadcast %c128_i32_17 : i32 to vector<8x128xi32>
      %48 = arith.select %46, %42, %47 : vector<8x128xi1>, vector<8x128xi32>
      %c0_18 = arith.constant 0 : index
      %c0_19 = arith.constant 0 : index
      %49 = vector.load %arg5[%c0_18, %c0_19] : memref<8x128xi32, #tpu.memory_space<vmem>>, vector<8x128xi32>
      tpu.vector_store %arg5[%c0_18, %c0_19], %48 {strides = array<i32>} : memref<8x128xi32, #tpu.memory_space<vmem>>, vector<8x128xi32>,
    } else {
    }
    %c128_i32 = arith.constant 128 : i32
    %3 = arith.muli %arg1, %c128_i32 : i32
    %4 = tpu.assume_multiple %3, 128 : i32
    %c0 = arith.constant 0 : index
    %5 = arith.index_cast %4 : i32 to index
    %6 = vector.load %arg5[%c0, %5] : memref<8x128xi32, #tpu.memory_space<vmem>>, vector<8x128xi32>
    %7 = tpu.iota {dimensions = array<i32: 2>} : vector<1x1x128xi32>
    %8 = vector.shape_cast %6 : vector<8x128xi32> to vector<8x128x1xi32>
    %9 = vector.broadcast %8 : vector<8x128x1xi32> to vector<8x128x128xi32>
    %10 = vector.broadcast %7 : vector<1x1x128xi32> to vector<8x128x128xi32>
    %11 = arith.cmpi eq, %9, %10 : vector<8x128x128xi32>
    %12 = arith.extui %11 : vector<8x128x128xi1> to vector<8x128x128xi32>
    %13 = arith.sitofp %12 : vector<8x128x128xi32> to vector<8x128x128xf32>
    %14 = arith.truncf %13 : vector<8x128x128xf32> to vector<8x128x128xbf16>
    %cst = arith.constant 1.000000e+00 : bf16
    %15 = vector.broadcast %cst : bf16 to vector<8x1x128xbf16>
    "tpu.trace_start"() <{level = 10 : i32, message = "bqw,bwv->bqv"}> : () -> ()
    %cst_1 = arith.constant dense<0.000000e+00> : vector<8x1x128xf32>
    %16 = tpu.matmul %15, %14, %cst_1 {dimension_numbers = #tpu.dot_dimension_numbers<[2], [1], [1], [2], [0, 0, 0, 1, 1, 2], [0], [0]>} : vector<8x1x128xbf16>, vector<8x128x128xbf16>, vector<8x1x128xf32> -> vector<8x1x128xf32>
    "tpu.trace_stop"() : () -> ()
    %c0_2 = arith.constant 0 : index
    %c0_3 = arith.constant 0 : index
    %17 = vector.load %arg4[%c0_2, %c0_3] : memref<8x128xf32, #tpu.memory_space<vmem>>, vector<8x128xf32>
    %18 = vector.shape_cast %16 : vector<8x1x128xf32> to vector<8x128xf32>
    %19 = arith.addf %17, %18 : vector<8x128xf32>
    %c0_4 = arith.constant 0 : index
    %c0_5 = arith.constant 0 : index
    %20 = vector.load %arg4[%c0_4, %c0_5] : memref<8x128xf32, #tpu.memory_space<vmem>>, vector<8x128xf32>
    tpu.vector_store %arg4[%c0_4, %c0_5], %19 {strides = array<i32>} : memref<8x128xf32, #tpu.memory_space<vmem>>, vector<8x128xf32>,
    return
  }
  func.func @transform_0(%arg0: i32, %arg1: i32) -> (i32, i32) {
    %c0_i32 = arith.constant 0 : i32
    %c0_i32_0 = arith.constant 0 : i32
    return %arg0, %c0_i32 : i32, i32
  }
  func.func @transform_1(%arg0: i32, %arg1: i32) -> (i32, i32) {
    %c0_i32 = arith.constant 0 : i32
    %c0_i32_0 = arith.constant 0 : i32
    return %arg0, %c0_i32 : i32, i32
  }
  func.func @transform_2(%arg0: i32, %arg1: i32) -> (i32, i32) {
    %c0_i32 = arith.constant 0 : i32
    %c0_i32_0 = arith.constant 0 : i32
    return %arg0, %c0_i32 : i32, i32
  }
}

</mosaic_0001>

<bundles_post_ra>
// kernel: tpu_custom_call.1
= control target key start
LH: loop header
LB: loop body
LE: loop exit
PB: predicated region body
PF: predicated region fallthrough
CT: control target
= control target key end

     0   :  { %7 = vsyncpa [#allocation4], 0  ;;  %s2429_s0 = inlined_call_operand.hbm [shape: s32[8,130], index: 0, kind: input, shape index: {}]   ;;  %s2430_s1 = inlined_call_operand.hbm [shape: s32[8,130], index: 1, kind: input, shape index: {}]   ;;  %s2431_s2 = inlined_call_operand.hbm [shape: f32[8,128], index: 2, kind: output, shape index: {}]  }
   0x1   :  { %8 = vsyncpa [#allocation7], 0 }
   0x2   :  { %9 = vsyncpa [#allocation5], 0  ;;  %s2002_s9 = smov [#allocation3]   ;;  %s2003_s11 = smov [#allocation6]  }
   0x3   :  { %s16_s10 = sshll.u32 %s2002_s9, 4  ;;  %s26_s12 = sshll.u32 %s2003_s11, 4  ;;  %s17_s10 = int_to_ptr.vmem [resolvable:$true] %s16_s10  ;;  %s27_s12 = int_to_ptr.vmem [resolvable:$true] %s26_s12 }
   0x4   :  { %s1944_s13 = scalar_lea.vmem %s17_s10, 256  ;;  %p1949_p1 = scmp.lt.s32.totalorder %s17_s10, %s17_s10 }
   0x5   :  { %p1945_p0 = scmp.ne.s32.totalorder %s17_s10, %s1944_s13  ;;  %p1950_p2 = scmp.lt.s32.totalorder %s1944_s13, %s1944_s13 }
   0x7   :  { %p1951_p3 = por %p1950_p2, %p1949_p1 }
   0x9   :  { %p1952_p4 = pnand %p1951_p3, %p1945_p0 }
   0xb   :  { %1955 = shalt.err (!%p1952_p4)
}
   0xc   :  { %19 = dma.hbm_to_vmem [thread:$0]  %s2429_s0, 256, %s17_s10, [#allocation4]  }
   0xd   :  { %s1964_s16 = scalar_lea.vmem %s27_s12, 256  ;;  %p1969_p6 = scmp.lt.s32.totalorder %s27_s12, %s27_s12 }
   0xe   :  { %p1965_p5 = scmp.ne.s32.totalorder %s27_s12, %s1964_s16  ;;  %p1970_p7 = scmp.lt.s32.totalorder %s1964_s16, %s1964_s16 }
  0x10   :  { %p1971_p8 = por %p1970_p7, %p1969_p6 }
  0x12   :  { %p1972_p9 = pnand %p1971_p8, %p1965_p5 }
  0x14   :  { %1975 = shalt.err (!%p1972_p9)
}
  0x15   :  { %29 = dma.hbm_to_vmem [thread:$0]  %s2430_s1, 256, %s27_s12, [#allocation7]  }
  0x16   :  { %1996 = dma.done.wait [#allocation4], 256  }
  0x17   :  { %1997 = vsyncadd [#allocation4], 4294967040 }
  0x18   :  { %1998 = dma.done.wait [#allocation7], 256  }
  0x19   :  { %1999 = vsyncadd [#allocation7], 4294967040  ;;  %v45_v0 = vld [vmem:[#allocation6] sm:$0xff]  ;;  %v43_v1 = vld [vmem:[#allocation3] sm:$0xff]  ;;  %s2004_s19 = smov 127   ;;  %s2005_s0 = smov 126   ;;  %v83_v9 = vlaneseq }
  0x1a   :  { %55 = vrot.lane.b32.xlu1 %v45_v0, %s2004_s19  ;;  %48 = vrot.lane.b32.xlu0 %v43_v1, %s2004_s19  ;;  %v46_v2 = vld [vmem:[#allocation6 + $0x8] sm:$0xff]  ;;  %v44_v3 = vld [vmem:[#allocation3 + $0x8] sm:$0xff]  ;;  %vm52_vm0 = vcmask 1039360   ;;  %v47_v6 = vmul.u32 4, %v43_v1  ;;  %vm66_vm1 = vcmask 1031168   ;;  %v2006_v12 = vmov 0.0  }
  0x1b   :  { %1767 = vmatprep.subr.bf16.mxu0 %v2006_v12  ;;  %1787 = vmatprep.subr.bf16.mxu1 %v2006_v12  ;;  %v86_v16 = vshrl.u32 %v83_v9, 7  ;;  %vm2007_vm3 = vmmov 0   ;;  %v2078_v42 = vand.u32 127, %v83_v9  ;;  %v2008_v45 = vmov 1.0|1.0   ;;  %s2010_s1 = smov [#allocation8]  }
  0x1c   :  { %1783 = vmatprep.mubr.msk.bf16.mxu0 %vm2007_vm3, %v2006_v12  ;;  %1803 = vmatprep.mubr.msk.bf16.mxu1 %vm2007_vm3, %v2006_v12  ;;  %s1428_s20 = sshll.u32 %s2010_s1, 4  ;;  %s1429_s20 = int_to_ptr.vmem [resolvable:$true] %s1428_s20 }
  0x1d   :  { %v87_v22 = vsub.s32 0, %v86_v16  ;;  %v221_v24 = vsub.s32 2, %v86_v16  ;;  %v288_v25 = vsub.s32 3, %v86_v16  ;;  %v355_v26 = vsub.s32 4, %v86_v16  ;;  %s1976_s21 = scalar_lea.vmem %s1429_s20, 128  ;;  %p1981_p11 = scmp.lt.s32.totalorder %s1429_s20, %s1429_s20 }
  0x1e   :  { %57 = vrot.lane.b32.xlu1 %v46_v2, %s2004_s19  ;;  %50 = vrot.lane.b32.xlu0 %v44_v3, %s2004_s19  ;;  %v422_v28 = vsub.s32 5, %v86_v16  ;;  %v489_v29 = vsub.s32 6, %v86_v16  ;;  %v556_v30 = vsub.s32 7, %v86_v16  ;;  %v154_v33 = vsub.s32 1, %v86_v16  ;;  %p1977_p10 = scmp.ne.s32.totalorder %s1429_s20, %s1976_s21  ;;  %p1982_p12 = scmp.lt.s32.totalorder %s1976_s21, %s1976_s21 }
  0x20   :  { %p1983_p13 = por %p1982_p12, %p1981_p11 }
  0x22   :  { %71 = vrot.lane.b32.xlu1 %v46_v2, %s2005_s0  ;;  %69 = vrot.lane.b32.xlu0 %v45_v0, %s2005_s0  ;;  %p1984_p0 = pnand %p1983_p13, %p1977_p10 }
  0x26   :  { %64 = vrot.lane.b32.xlu1 %v44_v3, %s2005_s0  ;;  %62 = vrot.lane.b32.xlu0 %v43_v1, %s2005_s0 }
  0x8c   :  { %v56_v4 = vpop.permute.xlu1 %55  ;;  %v49_v5 = vpop.permute.xlu0 %48 }
  0x90   :  { %v58_v7 = vpop.permute.xlu1 %57  ;;  %v51_v8 = vpop.permute.xlu0 %50 }
  0x91   :  { %v53_v10 = vsel %vm52_vm0, %v49_v5, %v51_v8  ;;  %v59_v11 = vsel %vm52_vm0, %v56_v4, %v58_v7 }
  0x92   :  { %v54_v13 = vadd.s32 %v53_v10, %v47_v6  ;;  %v60_v17 = vmul.u32 %v59_v11, %v45_v0 }
  0x94   :  { %v72_v14 = vpop.permute.xlu1 %71  ;;  %v70_v15 = vpop.permute.xlu0 %69  ;;  %v61_v20 = vmul.u32 4, %v54_v13  ;;  %v2009_v13 = vmov 1065369472  }
  0x95   :  { %v73_v18 = vsel %vm66_vm1, %v70_v15, %v72_v14 }
  0x96   :  { %v74_v19 = vmul.u32 %v73_v18, %v60_v17 }
  0x98   :  { %v65_v21 = vpop.permute.xlu1 %64  ;;  %v63_v23 = vpop.permute.xlu0 %62  ;;  %vm75_vm2 = vcmp.gt.s32.totalorder %v74_v19, 0 }
  0x99   :  { %v67_v27 = vsel %vm66_vm1, %v63_v23, %v65_v21 }
  0x9a   :  { %v68_v31 = vadd.s32 %v67_v27, %v61_v20 }
  0x9c   :  { %v76_v32 = vsel %vm75_vm2, %v68_v31, 128 }
  0x9d   :  { %v88_v34 = vrot.slane %v76_v32, %v87_v22  ;;  %v2037_v35 = vrot.slane %v76_v32, %v221_v24  ;;  %v2039_v36 = vrot.slane %v76_v32, %v288_v25  ;;  %v2041_v37 = vrot.slane %v76_v32, %v355_v26 }
  0x9e   :  { %v2043_v38 = vrot.slane %v76_v32, %v422_v28  ;;  %v2045_v39 = vrot.slane %v76_v32, %v489_v29  ;;  %v2047_v40 = vrot.slane %v76_v32, %v556_v30  ;;  %v155_v41 = vrot.slane %v76_v32, %v154_v33 }
  0x9f   :  { %150 = vbcast.lane.b32.xlu1 %v88_v34, 376  ;;  %146 = vbcast.lane.b32.xlu0 %v88_v34, 368 }
  0xa3   :  { %217 = vbcast.lane.b32.xlu1 %v155_v41, 376  ;;  %213 = vbcast.lane.b32.xlu0 %v155_v41, 368 }
  0xa7   :  { %142 = vbcast.lane.b32.xlu1 %v88_v34, 360  ;;  %138 = vbcast.lane.b32.xlu0 %v88_v34, 352 }
  0xab   :  { %209 = vbcast.lane.b32.xlu1 %v155_v41, 360  ;;  %205 = vbcast.lane.b32.xlu0 %v155_v41, 352 }
  0xaf   :  { %134 = vbcast.lane.b32.xlu1 %v88_v34, 344  ;;  %130 = vbcast.lane.b32.xlu0 %v88_v34, 336 }
  0xb3   :  { %201 = vbcast.lane.b32.xlu1 %v155_v41, 344  ;;  %197 = vbcast.lane.b32.xlu0 %v155_v41, 336 }
  0xb7   :  { %126 = vbcast.lane.b32.xlu1 %v88_v34, 328  ;;  %122 = vbcast.lane.b32.xlu0 %v88_v34, 320 }
  0xbb   :  { %193 = vbcast.lane.b32.xlu1 %v155_v41, 328  ;;  %189 = vbcast.lane.b32.xlu0 %v155_v41, 320 }
  0xbf   :  { %118 = vbcast.lane.b32.xlu1 %v88_v34, 312  ;;  %114 = vbcast.lane.b32.xlu0 %v88_v34, 304 }
  0xc3   :  { %185 = vbcast.lane.b32.xlu1 %v155_v41, 312  ;;  %181 = vbcast.lane.b32.xlu0 %v155_v41, 304 }
  0xc7   :  { %110 = vbcast.lane.b32.xlu1 %v88_v34, 296  ;;  %106 = vbcast.lane.b32.xlu0 %v88_v34, 288 }
  0xcb   :  { %177 = vbcast.lane.b32.xlu1 %v155_v41, 296  ;;  %173 = vbcast.lane.b32.xlu0 %v155_v41, 288 }
  0xcf   :  { %102 = vbcast.lane.b32.xlu1 %v88_v34, 280  ;;  %98 = vbcast.lane.b32.xlu0 %v88_v34, 272 }
  0xd3   :  { %169 = vbcast.lane.b32.xlu1 %v155_v41, 280  ;;  %165 = vbcast.lane.b32.xlu0 %v155_v41, 272 }
  0xd7   :  { %94 = vbcast.lane.b32.xlu1 %v88_v34, 264  ;;  %90 = vbcast.lane.b32.xlu0 %v88_v34, 256 }
  0xdb   :  { %161 = vbcast.lane.b32.xlu1 %v155_v41, 264  ;;  %157 = vbcast.lane.b32.xlu0 %v155_v41, 256 }
  0xdf   :  { %284 = vbcast.lane.b32.xlu1 %v2037_v35, 376  ;;  %280 = vbcast.lane.b32.xlu0 %v2037_v35, 368 }
  0xe3   :  { %351 = vbcast.lane.b32.xlu1 %v2039_v36, 376  ;;  %347 = vbcast.lane.b32.xlu0 %v2039_v36, 368 }
  0xe7   :  { %276 = vbcast.lane.b32.xlu1 %v2037_v35, 360  ;;  %272 = vbcast.lane.b32.xlu0 %v2037_v35, 352 }
  0xeb   :  { %343 = vbcast.lane.b32.xlu1 %v2039_v36, 360  ;;  %339 = vbcast.lane.b32.xlu0 %v2039_v36, 352 }
  0xef   :  { %268 = vbcast.lane.b32.xlu1 %v2037_v35, 344  ;;  %264 = vbcast.lane.b32.xlu0 %v2037_v35, 336 }
  0xf3   :  { %335 = vbcast.lane.b32.xlu1 %v2039_v36, 344  ;;  %331 = vbcast.lane.b32.xlu0 %v2039_v36, 336 }
  0xf7   :  { %260 = vbcast.lane.b32.xlu1 %v2037_v35, 328  ;;  %256 = vbcast.lane.b32.xlu0 %v2037_v35, 320 }
  0xfb   :  { %327 = vbcast.lane.b32.xlu1 %v2039_v36, 328  ;;  %323 = vbcast.lane.b32.xlu0 %v2039_v36, 320 }
  0xff   :  { %252 = vbcast.lane.b32.xlu1 %v2037_v35, 312  ;;  %248 = vbcast.lane.b32.xlu0 %v2037_v35, 304 }
 0x103   :  { %319 = vbcast.lane.b32.xlu1 %v2039_v36, 312  ;;  %315 = vbcast.lane.b32.xlu0 %v2039_v36, 304 }
 0x107   :  { %244 = vbcast.lane.b32.xlu1 %v2037_v35, 296  ;;  %240 = vbcast.lane.b32.xlu0 %v2037_v35, 288 }
 0x10b   :  { %311 = vbcast.lane.b32.xlu1 %v2039_v36, 296  ;;  %307 = vbcast.lane.b32.xlu0 %v2039_v36, 288 }
 0x10f   :  { %236 = vbcast.lane.b32.xlu1 %v2037_v35, 280  ;;  %232 = vbcast.lane.b32.xlu0 %v2037_v35, 272 }
 0x111   :  { %v151_v43 = vpop.permute.xlu1 %150  ;;  %v147_v44 = vpop.permute.xlu0 %146 }
 0x112   :  { %vm636_vm4 = vcmp.eq.s32.totalorder %v151_v43, %v2078_v42  ;;  %vm635_vm5 = vcmp.eq.s32.totalorder %v147_v44, %v2078_v42 }
 0x113   :  { %303 = vbcast.lane.b32.xlu1 %v2039_v36, 280  ;;  %299 = vbcast.lane.b32.xlu0 %v2039_v36, 272  ;;  %vm1567_vm6 = vmpackc.low %vm636_vm4, %vm635_vm5 }
 0x114   :  { %1768 = vmatpush3.bf16.msk.msra.mxu0 %vm1567_vm6, %v2008_v45 }
 0x115   :  { %v218_v46 = vpop.permute.xlu1 %217  ;;  %v214_v47 = vpop.permute.xlu0 %213  ;;  %1769 = vmatprep.subr.bf16.mxu0 %v2006_v12 }
 0x116   :  { %vm652_vm7 = vcmp.eq.s32.totalorder %v218_v46, %v2078_v42  ;;  %vm651_vm8 = vcmp.eq.s32.totalorder %v214_v47, %v2078_v42 }
 0x117   :  { %228 = vbcast.lane.b32.xlu1 %v2037_v35, 264  ;;  %224 = vbcast.lane.b32.xlu0 %v2037_v35, 256  ;;  %vm1583_vm9 = vmpackc.low %vm652_vm7, %vm651_vm8 }
 0x118   :  { %1788 = vmatpush3.bf16.msk.msra.mxu1 %vm1583_vm9, %v2008_v45 }
 0x119   :  { %v143_v48 = vpop.permute.xlu1 %142  ;;  %v139_v49 = vpop.permute.xlu0 %138  ;;  %1789 = vmatprep.subr.bf16.mxu1 %v2006_v12 }
 0x11a   :  { %vm634_vm10 = vcmp.eq.s32.totalorder %v143_v48, %v2078_v42  ;;  %vm633_vm11 = vcmp.eq.s32.totalorder %v139_v49, %v2078_v42 }
 0x11b   :  { %vm1569_vm12 = vmpackc.low %vm634_vm10, %vm633_vm11  ;;  %295 = vbcast.lane.b32.xlu1 %v2039_v36, 264  ;;  %291 = vbcast.lane.b32.xlu0 %v2039_v36, 256 }
 0x11c   :  { %1770 = vmatpush3.bf16.msk.msra.mxu0 %vm1569_vm12, %v2008_v45 }
 0x11d   :  { %v210_v50 = vpop.permute.xlu1 %209  ;;  %v206_v51 = vpop.permute.xlu0 %205  ;;  %1771 = vmatprep.subr.bf16.mxu0 %v2006_v12 }
 0x11e   :  { %vm650_vm13 = vcmp.eq.s32.totalorder %v210_v50, %v2078_v42  ;;  %vm649_vm14 = vcmp.eq.s32.totalorder %v206_v51, %v2078_v42 }
 0x11f   :  { %vm1585_vm15 = vmpackc.low %vm650_vm13, %vm649_vm14  ;;  %418 = vbcast.lane.b32.xlu1 %v2041_v37, 376  ;;  %414 = vbcast.lane.b32.xlu0 %v2041_v37, 368 }
 0x120   :  { %1790 = vmatpush3.bf16.msk.msra.mxu1 %vm1585_vm15, %v2008_v45 }
 0x121   :  { %v135_v52 = vpop.permute.xlu1 %134  ;;  %v131_v53 = vpop.permute.xlu0 %130  ;;  %1791 = vmatprep.subr.bf16.mxu1 %v2006_v12 }
 0x122   :  { %vm632_vm0 = vcmp.eq.s32.totalorder %v135_v52, %v2078_v42  ;;  %vm631_vm1 = vcmp.eq.s32.totalorder %v131_v53, %v2078_v42 }
 0x123   :  { %vm1571_vm2 = vmpackc.low %vm632_vm0, %vm631_vm1  ;;  %485 = vbcast.lane.b32.xlu1 %v2043_v38, 376  ;;  %481 = vbcast.lane.b32.xlu0 %v2043_v38, 368 }
 0x124   :  { %1772 = vmatpush3.bf16.msk.msra.mxu0 %vm1571_vm2, %v2008_v45 }
 0x125   :  { %v202_v54 = vpop.permute.xlu1 %201  ;;  %v198_v55 = vpop.permute.xlu0 %197  ;;  %1773 = vmatprep.subr.bf16.mxu0 %v2006_v12 }
 0x126   :  { %vm648_vm4 = vcmp.eq.s32.totalorder %v202_v54, %v2078_v42  ;;  %vm647_vm5 = vcmp.eq.s32.totalorder %v198_v55, %v2078_v42 }
 0x127   :  { %vm1587_vm6 = vmpackc.low %vm648_vm4, %vm647_vm5  ;;  %410 = vbcast.lane.b32.xlu1 %v2041_v37, 360  ;;  %406 = vbcast.lane.b32.xlu0 %v2041_v37, 352 }
 0x128   :  { %1792 = vmatpush3.bf16.msk.msra.mxu1 %vm1587_vm6, %v2008_v45 }
 0x129   :  { %v127_v56 = vpop.permute.xlu1 %126  ;;  %v123_v57 = vpop.permute.xlu0 %122  ;;  %1793 = vmatprep.subr.bf16.mxu1 %v2006_v12 }
 0x12a   :  { %vm630_vm7 = vcmp.eq.s32.totalorder %v127_v56, %v2078_v42  ;;  %vm629_vm8 = vcmp.eq.s32.totalorder %v123_v57, %v2078_v42 }
 0x12b   :  { %vm1573_vm9 = vmpackc.low %vm630_vm7, %vm629_vm8  ;;  %477 = vbcast.lane.b32.xlu1 %v2043_v38, 360  ;;  %473 = vbcast.lane.b32.xlu0 %v2043_v38, 352 }
 0x12c   :  { %1774 = vmatpush3.bf16.msk.msra.mxu0 %vm1573_vm9, %v2008_v45 }
 0x12d   :  { %v194_v58 = vpop.permute.xlu1 %193  ;;  %v190_v59 = vpop.permute.xlu0 %189  ;;  %1775 = vmatprep.subr.bf16.mxu0 %v2006_v12 }
 0x12e   :  { %vm646_vm10 = vcmp.eq.s32.totalorder %v194_v58, %v2078_v42  ;;  %vm645_vm11 = vcmp.eq.s32.totalorder %v190_v59, %v2078_v42 }
 0x12f   :  { %vm1589_vm12 = vmpackc.low %vm646_vm10, %vm645_vm11  ;;  %402 = vbcast.lane.b32.xlu1 %v2041_v37, 344  ;;  %398 = vbcast.lane.b32.xlu0 %v2041_v37, 336 }
 0x130   :  { %1794 = vmatpush3.bf16.msk.msra.mxu1 %vm1589_vm12, %v2008_v45 }
 0x131   :  { %v119_v60 = vpop.permute.xlu1 %118  ;;  %v115_v61 = vpop.permute.xlu0 %114  ;;  %1795 = vmatprep.subr.bf16.mxu1 %v2006_v12 }
 0x132   :  { %vm628_vm13 = vcmp.eq.s32.totalorder %v119_v60, %v2078_v42  ;;  %vm627_vm14 = vcmp.eq.s32.totalorder %v115_v61, %v2078_v42 }
 0x133   :  { %vm1575_vm15 = vmpackc.low %vm628_vm13, %vm627_vm14  ;;  %469 = vbcast.lane.b32.xlu1 %v2043_v38, 344  ;;  %465 = vbcast.lane.b32.xlu0 %v2043_v38, 336 }
 0x134   :  { %1776 = vmatpush3.bf16.msk.msra.mxu0 %vm1575_vm15, %v2008_v45 }
 0x135   :  { %v186_v62 = vpop.permute.xlu1 %185  ;;  %v182_v63 = vpop.permute.xlu0 %181  ;;  %1777 = vmatprep.subr.bf16.mxu0 %v2006_v12 }
 0x136   :  { %vm644_vm0 = vcmp.eq.s32.totalorder %v186_v62, %v2078_v42  ;;  %vm643_vm1 = vcmp.eq.s32.totalorder %v182_v63, %v2078_v42 }
 0x137   :  { %vm1591_vm2 = vmpackc.low %vm644_vm0, %vm643_vm1  ;;  %394 = vbcast.lane.b32.xlu1 %v2041_v37, 328  ;;  %390 = vbcast.lane.b32.xlu0 %v2041_v37, 320 }
 0x138   :  { %1796 = vmatpush3.bf16.msk.msra.mxu1 %vm1591_vm2, %v2008_v45 }
 0x139   :  { %v111_v0 = vpop.permute.xlu1 %110  ;;  %v107_v1 = vpop.permute.xlu0 %106  ;;  %1797 = vmatprep.subr.bf16.mxu1 %v2006_v12 }
 0x13a   :  { %vm626_vm4 = vcmp.eq.s32.totalorder %v111_v0, %v2078_v42  ;;  %vm625_vm5 = vcmp.eq.s32.totalorder %v107_v1, %v2078_v42 }
 0x13b   :  { %vm1577_vm6 = vmpackc.low %vm626_vm4, %vm625_vm5  ;;  %461 = vbcast.lane.b32.xlu1 %v2043_v38, 328  ;;  %457 = vbcast.lane.b32.xlu0 %v2043_v38, 320 }
 0x13c   :  { %1778 = vmatpush3.bf16.msk.msra.mxu0 %vm1577_vm6, %v2008_v45 }
 0x13d   :  { %v178_v2 = vpop.permute.xlu1 %177  ;;  %v174_v3 = vpop.permute.xlu0 %173  ;;  %1779 = vmatprep.subr.bf16.mxu0 %v2006_v12 }
 0x13e   :  { %vm642_vm7 = vcmp.eq.s32.totalorder %v178_v2, %v2078_v42  ;;  %vm641_vm8 = vcmp.eq.s32.totalorder %v174_v3, %v2078_v42 }
 0x13f   :  { %vm1593_vm9 = vmpackc.low %vm642_vm7, %vm641_vm8  ;;  %386 = vbcast.lane.b32.xlu1 %v2041_v37, 312  ;;  %382 = vbcast.lane.b32.xlu0 %v2041_v37, 304 }
 0x140   :  { %1798 = vmatpush3.bf16.msk.msra.mxu1 %vm1593_vm9, %v2008_v45 }
 0x141   :  { %v103_v4 = vpop.permute.xlu1 %102  ;;  %v99_v5 = vpop.permute.xlu0 %98  ;;  %1799 = vmatprep.subr.bf16.mxu1 %v2006_v12 }
 0x142   :  { %vm624_vm10 = vcmp.eq.s32.totalorder %v103_v4, %v2078_v42  ;;  %vm623_vm11 = vcmp.eq.s32.totalorder %v99_v5, %v2078_v42 }
 0x143   :  { %vm1579_vm12 = vmpackc.low %vm624_vm10, %vm623_vm11  ;;  %453 = vbcast.lane.b32.xlu1 %v2043_v38, 312  ;;  %449 = vbcast.lane.b32.xlu0 %v2043_v38, 304 }
 0x144   :  { %1780 = vmatpush3.bf16.msk.msra.mxu0 %vm1579_vm12, %v2008_v45 }
 0x145   :  { %v170_v6 = vpop.permute.xlu1 %169  ;;  %v166_v7 = vpop.permute.xlu0 %165  ;;  %1781 = vmatprep.subr.bf16.mxu0 %v2006_v12 }
 0x146   :  { %vm640_vm13 = vcmp.eq.s32.totalorder %v170_v6, %v2078_v42  ;;  %vm639_vm14 = vcmp.eq.s32.totalorder %v166_v7, %v2078_v42 }
 0x147   :  { %vm1595_vm15 = vmpackc.low %vm640_vm13, %vm639_vm14  ;;  %378 = vbcast.lane.b32.xlu1 %v2041_v37, 296  ;;  %374 = vbcast.lane.b32.xlu0 %v2041_v37, 288 }
 0x148   :  { %1800 = vmatpush3.bf16.msk.msra.mxu1 %vm1595_vm15, %v2008_v45 }
 0x149   :  { %v95_v8 = vpop.permute.xlu1 %94  ;;  %v91_v9 = vpop.permute.xlu0 %90  ;;  %1801 = vmatprep.subr.bf16.mxu1 %v2006_v12 }
 0x14a   :  { %vm622_vm0 = vcmp.eq.s32.totalorder %v95_v8, %v2078_v42  ;;  %vm621_vm1 = vcmp.eq.s32.totalorder %v91_v9, %v2078_v42 }
 0x14b   :  { %vm1581_vm2 = vmpackc.low %vm622_vm0, %vm621_vm1  ;;  %445 = vbcast.lane.b32.xlu1 %v2043_v38, 296  ;;  %441 = vbcast.lane.b32.xlu0 %v2043_v38, 288 }
 0x14c   :  { %1782 = vmatpush3.bf16.msk.msra.mxu0 %vm1581_vm2, %v2008_v45 }
 0x14d   :  { %v162_v10 = vpop.permute.xlu1 %161  ;;  %v158_v11 = vpop.permute.xlu0 %157  ;;  %1807 = vmatprep.subr.bf16.mxu0 %v2006_v12 }
 0x14e   :  { %vm638_vm4 = vcmp.eq.s32.totalorder %v162_v10, %v2078_v42  ;;  %vm637_vm5 = vcmp.eq.s32.totalorder %v158_v11, %v2078_v42 }
 0x14f   :  { %vm1597_vm6 = vmpackc.low %vm638_vm4, %vm637_vm5  ;;  %370 = vbcast.lane.b32.xlu1 %v2041_v37, 280  ;;  %366 = vbcast.lane.b32.xlu0 %v2041_v37, 272 }
 0x150   :  { %1802 = vmatpush3.bf16.msk.msra.mxu1 %vm1597_vm6, %v2008_v45  ;;  %1784 = vmatmul.mubr.bf16.vlgmr.msra.gmra.mxu0 %v2009_v13 }
 0x151   :  { %v285_v14 = vpop.permute.xlu1 %284  ;;  %v281_v15 = vpop.permute.xlu0 %280  ;;  %1827 = vmatprep.subr.bf16.mxu1 %v2006_v12  ;;  %1823 = vmatprep.mubr.msk.bf16.mxu0 %vm2007_vm3, %v2006_v12 }
 0x152   :  { %vm668_vm7 = vcmp.eq.s32.totalorder %v285_v14, %v2078_v42  ;;  %vm667_vm8 = vcmp.eq.s32.totalorder %v281_v15, %v2078_v42 }
 0x153   :  { %vm1599_vm9 = vmpackc.low %vm668_vm7, %vm667_vm8  ;;  %437 = vbcast.lane.b32.xlu1 %v2043_v38, 280  ;;  %433 = vbcast.lane.b32.xlu0 %v2043_v38, 272 }
 0x154   :  { %1808 = vmatpush3.bf16.msk.msra.mxu0 %vm1599_vm9, %v2008_v45  ;;  %1804 = vmatmul.mubr.bf16.vlgmr.msra.gmra.mxu1 %v2009_v13 }
 0x155   :  { %v352_v16 = vpop.permute.xlu1 %351  ;;  %v348_v17 = vpop.permute.xlu0 %347  ;;  %1809 = vmatprep.subr.bf16.mxu0 %v2006_v12  ;;  %1843 = vmatprep.mubr.msk.bf16.mxu1 %vm2007_vm3, %v2006_v12 }
 0x156   :  { %vm684_vm10 = vcmp.eq.s32.totalorder %v352_v16, %v2078_v42  ;;  %vm683_vm11 = vcmp.eq.s32.totalorder %v348_v17, %v2078_v42 }
 0x157   :  { %vm1615_vm12 = vmpackc.low %vm684_vm10, %vm683_vm11  ;;  %362 = vbcast.lane.b32.xlu1 %v2041_v37, 264  ;;  %358 = vbcast.lane.b32.xlu0 %v2041_v37, 256 }
 0x158   :  { %1828 = vmatpush3.bf16.msk.msra.mxu1 %vm1615_vm12, %v2008_v45 }
 0x159   :  { %v277_v18 = vpop.permute.xlu1 %276  ;;  %v273_v19 = vpop.permute.xlu0 %272  ;;  %1829 = vmatprep.subr.bf16.mxu1 %v2006_v12 }
 0x15a   :  { %vm666_vm13 = vcmp.eq.s32.totalorder %v277_v18, %v2078_v42  ;;  %vm665_vm14 = vcmp.eq.s32.totalorder %v273_v19, %v2078_v42 }
 0x15b   :  { %vm1601_vm15 = vmpackc.low %vm666_vm13, %vm665_vm14  ;;  %429 = vbcast.lane.b32.xlu1 %v2043_v38, 264  ;;  %425 = vbcast.lane.b32.xlu0 %v2043_v38, 256 }
 0x15c   :  { %1810 = vmatpush3.bf16.msk.msra.mxu0 %vm1601_vm15, %v2008_v45 }
 0x15d   :  { %v344_v20 = vpop.permute.xlu1 %343  ;;  %v340_v21 = vpop.permute.xlu0 %339  ;;  %1811 = vmatprep.subr.bf16.mxu0 %v2006_v12 }
 0x15e   :  { %vm682_vm0 = vcmp.eq.s32.totalorder %v344_v20, %v2078_v42  ;;  %vm681_vm1 = vcmp.eq.s32.totalorder %v340_v21, %v2078_v42 }
 0x15f   :  { %vm1617_vm2 = vmpackc.low %vm682_vm0, %vm681_vm1  ;;  %552 = vbcast.lane.b32.xlu1 %v2045_v39, 376  ;;  %548 = vbcast.lane.b32.xlu0 %v2045_v39, 368 }
 0x160   :  { %1830 = vmatpush3.bf16.msk.msra.mxu1 %vm1617_vm2, %v2008_v45 }
 0x161   :  { %v269_v22 = vpop.permute.xlu1 %268  ;;  %v265_v23 = vpop.permute.xlu0 %264  ;;  %1831 = vmatprep.subr.bf16.mxu1 %v2006_v12 }
 0x162   :  { %vm664_vm4 = vcmp.eq.s32.totalorder %v269_v22, %v2078_v42  ;;  %vm663_vm5 = vcmp.eq.s32.totalorder %v265_v23, %v2078_v42 }
 0x163   :  { %vm1603_vm6 = vmpackc.low %vm664_vm4, %vm663_vm5  ;;  %619 = vbcast.lane.b32.xlu1 %v2047_v40, 376  ;;  %615 = vbcast.lane.b32.xlu0 %v2047_v40, 368 }
 0x164   :  { %1812 = vmatpush3.bf16.msk.msra.mxu0 %vm1603_vm6, %v2008_v45 }
 0x165   :  { %v336_v24 = vpop.permute.xlu1 %335  ;;  %v332_v25 = vpop.permute.xlu0 %331  ;;  %1813 = vmatprep.subr.bf16.mxu0 %v2006_v12 }
 0x166   :  { %vm680_vm7 = vcmp.eq.s32.totalorder %v336_v24, %v2078_v42  ;;  %vm679_vm8 = vcmp.eq.s32.totalorder %v332_v25, %v2078_v42 }
 0x167   :  { %vm1619_vm9 = vmpackc.low %vm680_vm7, %vm679_vm8  ;;  %544 = vbcast.lane.b32.xlu1 %v2045_v39, 360  ;;  %540 = vbcast.lane.b32.xlu0 %v2045_v39, 352 }
 0x168   :  { %1832 = vmatpush3.bf16.msk.msra.mxu1 %vm1619_vm9, %v2008_v45 }
 0x169   :  { %v261_v26 = vpop.permute.xlu1 %260  ;;  %v257_v27 = vpop.permute.xlu0 %256  ;;  %1833 = vmatprep.subr.bf16.mxu1 %v2006_v12 }
 0x16a   :  { %vm662_vm10 = vcmp.eq.s32.totalorder %v261_v26, %v2078_v42  ;;  %vm661_vm11 = vcmp.eq.s32.totalorder %v257_v27, %v2078_v42 }
 0x16b   :  { %vm1605_vm12 = vmpackc.low %vm662_vm10, %vm661_vm11  ;;  %611 = vbcast.lane.b32.xlu1 %v2047_v40, 360  ;;  %607 = vbcast.lane.b32.xlu0 %v2047_v40, 352 }
 0x16c   :  { %1814 = vmatpush3.bf16.msk.msra.mxu0 %vm1605_vm12, %v2008_v45 }
 0x16d   :  { %v328_v28 = vpop.permute.xlu1 %327  ;;  %v324_v29 = vpop.permute.xlu0 %323  ;;  %1815 = vmatprep.subr.bf16.mxu0 %v2006_v12 }
 0x16e   :  { %vm678_vm13 = vcmp.eq.s32.totalorder %v328_v28, %v2078_v42  ;;  %vm677_vm14 = vcmp.eq.s32.totalorder %v324_v29, %v2078_v42 }
 0x16f   :  { %vm1621_vm15 = vmpackc.low %vm678_vm13, %vm677_vm14  ;;  %536 = vbcast.lane.b32.xlu1 %v2045_v39, 344  ;;  %532 = vbcast.lane.b32.xlu0 %v2045_v39, 336 }
 0x170   :  { %1834 = vmatpush3.bf16.msk.msra.mxu1 %vm1621_vm15, %v2008_v45 }
 0x171   :  { %v253_v30 = vpop.permute.xlu1 %252  ;;  %v249_v31 = vpop.permute.xlu0 %248  ;;  %1835 = vmatprep.subr.bf16.mxu1 %v2006_v12 }
 0x172   :  { %vm660_vm0 = vcmp.eq.s32.totalorder %v253_v30, %v2078_v42  ;;  %vm659_vm1 = vcmp.eq.s32.totalorder %v249_v31, %v2078_v42 }
 0x173   :  { %vm1607_vm2 = vmpackc.low %vm660_vm0, %vm659_vm1  ;;  %603 = vbcast.lane.b32.xlu1 %v2047_v40, 344  ;;  %599 = vbcast.lane.b32.xlu0 %v2047_v40, 336 }
 0x174   :  { %1816 = vmatpush3.bf16.msk.msra.mxu0 %vm1607_vm2, %v2008_v45 }
 0x175   :  { %v320_v32 = vpop.permute.xlu1 %319  ;;  %v316_v33 = vpop.permute.xlu0 %315  ;;  %1817 = vmatprep.subr.bf16.mxu0 %v2006_v12 }
 0x176   :  { %vm676_vm4 = vcmp.eq.s32.totalorder %v320_v32, %v2078_v42  ;;  %vm675_vm5 = vcmp.eq.s32.totalorder %v316_v33, %v2078_v42 }
 0x177   :  { %vm1623_vm6 = vmpackc.low %vm676_vm4, %vm675_vm5  ;;  %528 = vbcast.lane.b32.xlu1 %v2045_v39, 328  ;;  %524 = vbcast.lane.b32.xlu0 %v2045_v39, 320 }
 0x178   :  { %1836 = vmatpush3.bf16.msk.msra.mxu1 %vm1623_vm6, %v2008_v45 }
 0x179   :  { %v245_v34 = vpop.permute.xlu1 %244  ;;  %v241_v35 = vpop.permute.xlu0 %240  ;;  %1837 = vmatprep.subr.bf16.mxu1 %v2006_v12 }
 0x17a   :  { %vm658_vm7 = vcmp.eq.s32.totalorder %v245_v34, %v2078_v42  ;;  %vm657_vm8 = vcmp.eq.s32.totalorder %v241_v35, %v2078_v42 }
 0x17b   :  { %vm1609_vm9 = vmpackc.low %vm658_vm7, %vm657_vm8  ;;  %595 = vbcast.lane.b32.xlu1 %v2047_v40, 328  ;;  %591 = vbcast.lane.b32.xlu0 %v2047_v40, 320 }
 0x17c   :  { %1818 = vmatpush3.bf16.msk.msra.mxu0 %vm1609_vm9, %v2008_v45 }
 0x17d   :  { %v312_v36 = vpop.permute.xlu1 %311  ;;  %v308_v37 = vpop.permute.xlu0 %307  ;;  %1819 = vmatprep.subr.bf16.mxu0 %v2006_v12 }
 0x17e   :  { %vm674_vm10 = vcmp.eq.s32.totalorder %v312_v36, %v2078_v42  ;;  %vm673_vm11 = vcmp.eq.s32.totalorder %v308_v37, %v2078_v42 }
 0x17f   :  { %vm1625_vm12 = vmpackc.low %vm674_vm10, %vm673_vm11  ;;  %520 = vbcast.lane.b32.xlu1 %v2045_v39, 312  ;;  %516 = vbcast.lane.b32.xlu0 %v2045_v39, 304 }
 0x180   :  { %1838 = vmatpush3.bf16.msk.msra.mxu1 %vm1625_vm12, %v2008_v45 }
 0x181   :  { %v237_v38 = vpop.permute.xlu1 %236  ;;  %v233_v41 = vpop.permute.xlu0 %232  ;;  %1839 = vmatprep.subr.bf16.mxu1 %v2006_v12 }
 0x182   :  { %vm656_vm13 = vcmp.eq.s32.totalorder %v237_v38, %v2078_v42  ;;  %vm655_vm14 = vcmp.eq.s32.totalorder %v233_v41, %v2078_v42 }
 0x183   :  { %vm1611_vm15 = vmpackc.low %vm656_vm13, %vm655_vm14  ;;  %587 = vbcast.lane.b32.xlu1 %v2047_v40, 312  ;;  %583 = vbcast.lane.b32.xlu0 %v2047_v40, 304 }
 0x184   :  { %1820 = vmatpush3.bf16.msk.msra.mxu0 %vm1611_vm15, %v2008_v45 }
 0x185   :  { %v304_v43 = vpop.permute.xlu1 %303  ;;  %v300_v44 = vpop.permute.xlu0 %299  ;;  %1821 = vmatprep.subr.bf16.mxu0 %v2006_v12 }
 0x186   :  { %vm672_vm0 = vcmp.eq.s32.totalorder %v304_v43, %v2078_v42  ;;  %vm671_vm1 = vcmp.eq.s32.totalorder %v300_v44, %v2078_v42 }
 0x187   :  { %vm1627_vm2 = vmpackc.low %vm672_vm0, %vm671_vm1  ;;  %512 = vbcast.lane.b32.xlu1 %v2045_v39, 296  ;;  %508 = vbcast.lane.b32.xlu0 %v2045_v39, 288 }
 0x188   :  { %1840 = vmatpush3.bf16.msk.msra.mxu1 %vm1627_vm2, %v2008_v45 }
 0x189   :  { %v229_v46 = vpop.permute.xlu1 %228  ;;  %v225_v47 = vpop.permute.xlu0 %224  ;;  %1841 = vmatprep.subr.bf16.mxu1 %v2006_v12 }
 0x18a   :  { %vm654_vm4 = vcmp.eq.s32.totalorder %v229_v46, %v2078_v42  ;;  %vm653_vm5 = vcmp.eq.s32.totalorder %v225_v47, %v2078_v42 }
 0x18b   :  { %vm1613_vm6 = vmpackc.low %vm654_vm4, %vm653_vm5  ;;  %579 = vbcast.lane.b32.xlu1 %v2047_v40, 296  ;;  %575 = vbcast.lane.b32.xlu0 %v2047_v40, 288 }
 0x18c   :  { %1822 = vmatpush3.bf16.msk.msra.mxu0 %vm1613_vm6, %v2008_v45 }
 0x18d   :  { %v296_v48 = vpop.permute.xlu1 %295  ;;  %v292_v49 = vpop.permute.xlu0 %291  ;;  %1847 = vmatprep.subr.bf16.mxu0 %v2006_v12 }
 0x18e   :  { %vm670_vm7 = vcmp.eq.s32.totalorder %v296_v48, %v2078_v42  ;;  %vm669_vm8 = vcmp.eq.s32.totalorder %v292_v49, %v2078_v42 }
 0x18f   :  { %vm1629_vm9 = vmpackc.low %vm670_vm7, %vm669_vm8  ;;  %504 = vbcast.lane.b32.xlu1 %v2045_v39, 280  ;;  %500 = vbcast.lane.b32.xlu0 %v2045_v39, 272 }
 0x190   :  { %1842 = vmatpush3.bf16.msk.msra.mxu1 %vm1629_vm9, %v2008_v45  ;;  %1824 = vmatmul.mubr.bf16.vlgmr.msra.gmra.mxu0 %v2009_v13 }
 0x191   :  { %v419_v50 = vpop.permute.xlu1 %418  ;;  %v415_v51 = vpop.permute.xlu0 %414  ;;  %1867 = vmatprep.subr.bf16.mxu1 %v2006_v12  ;;  %1863 = vmatprep.mubr.msk.bf16.mxu0 %vm2007_vm3, %v2006_v12 }
 0x192   :  { %vm700_vm10 = vcmp.eq.s32.totalorder %v419_v50, %v2078_v42  ;;  %vm699_vm11 = vcmp.eq.s32.totalorder %v415_v51, %v2078_v42 }
 0x193   :  { %vm1631_vm12 = vmpackc.low %vm700_vm10, %vm699_vm11  ;;  %571 = vbcast.lane.b32.xlu1 %v2047_v40, 280  ;;  %567 = vbcast.lane.b32.xlu0 %v2047_v40, 272 }
 0x194   :  { %1848 = vmatpush3.bf16.msk.msra.mxu0 %vm1631_vm12, %v2008_v45  ;;  %1844 = vmatmul.mubr.bf16.vlgmr.msra.gmra.mxu1 %v2009_v13 }
 0x195   :  { %v486_v52 = vpop.permute.xlu1 %485  ;;  %v482_v53 = vpop.permute.xlu0 %481  ;;  %1849 = vmatprep.subr.bf16.mxu0 %v2006_v12  ;;  %1883 = vmatprep.mubr.msk.bf16.mxu1 %vm2007_vm3, %v2006_v12 }
 0x196   :  { %vm716_vm13 = vcmp.eq.s32.totalorder %v486_v52, %v2078_v42  ;;  %vm715_vm14 = vcmp.eq.s32.totalorder %v482_v53, %v2078_v42 }
 0x197   :  { %vm1647_vm15 = vmpackc.low %vm716_vm13, %vm715_vm14  ;;  %496 = vbcast.lane.b32.xlu1 %v2045_v39, 264  ;;  %492 = vbcast.lane.b32.xlu0 %v2045_v39, 256 }
 0x198   :  { %1868 = vmatpush3.bf16.msk.msra.mxu1 %vm1647_vm15, %v2008_v45 }
 0x199   :  { %v411_v54 = vpop.permute.xlu1 %410  ;;  %v407_v55 = vpop.permute.xlu0 %406  ;;  %1869 = vmatprep.subr.bf16.mxu1 %v2006_v12 }
 0x19a   :  { %vm698_vm0 = vcmp.eq.s32.totalorder %v411_v54, %v2078_v42  ;;  %vm697_vm1 = vcmp.eq.s32.totalorder %v407_v55, %v2078_v42 }
 0x19b   :  { %vm1633_vm2 = vmpackc.low %vm698_vm0, %vm697_vm1  ;;  %563 = vbcast.lane.b32.xlu1 %v2047_v40, 264  ;;  %559 = vbcast.lane.b32.xlu0 %v2047_v40, 256 }
 0x19c   :  { %1850 = vmatpush3.bf16.msk.msra.mxu0 %vm1633_vm2, %v2008_v45 }
 0x19d   :  { %v478_v56 = vpop.permute.xlu1 %477  ;;  %v474_v57 = vpop.permute.xlu0 %473  ;;  %1851 = vmatprep.subr.bf16.mxu0 %v2006_v12 }
 0x19e   :  { %vm714_vm4 = vcmp.eq.s32.totalorder %v478_v56, %v2078_v42  ;;  %vm713_vm5 = vcmp.eq.s32.totalorder %v474_v57, %v2078_v42 }
 0x19f   :  { %vm1649_vm6 = vmpackc.low %vm714_vm4, %vm713_vm5 }
 0x1a0   :  { %1870 = vmatpush3.bf16.msk.msra.mxu1 %vm1649_vm6, %v2008_v45 }
 0x1a1   :  { %v403_v39 = vpop.permute.xlu1 %402  ;;  %v399_v58 = vpop.permute.xlu0 %398  ;;  %1871 = vmatprep.subr.bf16.mxu1 %v2006_v12 }
 0x1a2   :  { %vm696_vm7 = vcmp.eq.s32.totalorder %v403_v39, %v2078_v42  ;;  %vm695_vm8 = vcmp.eq.s32.totalorder %v399_v58, %v2078_v42 }
 0x1a3   :  { %vm1635_vm9 = vmpackc.low %vm696_vm7, %vm695_vm8 }
 0x1a4   :  { %1852 = vmatpush3.bf16.msk.msra.mxu0 %vm1635_vm9, %v2008_v45 }
 0x1a5   :  { %v470_v40 = vpop.permute.xlu1 %469  ;;  %v466_v59 = vpop.permute.xlu0 %465  ;;  %1853 = vmatprep.subr.bf16.mxu0 %v2006_v12 }
 0x1a6   :  { %vm712_vm10 = vcmp.eq.s32.totalorder %v470_v40, %v2078_v42  ;;  %vm711_vm11 = vcmp.eq.s32.totalorder %v466_v59, %v2078_v42 }
 0x1a7   :  { %vm1651_vm12 = vmpackc.low %vm712_vm10, %vm711_vm11 }
 0x1a8   :  { %1872 = vmatpush3.bf16.msk.msra.mxu1 %vm1651_vm12, %v2008_v45 }
 0x1a9   :  { %v395_v60 = vpop.permute.xlu1 %394  ;;  %v391_v61 = vpop.permute.xlu0 %390  ;;  %1873 = vmatprep.subr.bf16.mxu1 %v2006_v12 }
 0x1aa   :  { %vm694_vm13 = vcmp.eq.s32.totalorder %v395_v60, %v2078_v42  ;;  %vm693_vm14 = vcmp.eq.s32.totalorder %v391_v61, %v2078_v42 }
 0x1ab   :  { %vm1637_vm15 = vmpackc.low %vm694_vm13, %vm693_vm14 }
 0x1ac   :  { %1854 = vmatpush3.bf16.msk.msra.mxu0 %vm1637_vm15, %v2008_v45 }
 0x1ad   :  { %v462_v62 = vpop.permute.xlu1 %461  ;;  %v458_v63 = vpop.permute.xlu0 %457  ;;  %1855 = vmatprep.subr.bf16.mxu0 %v2006_v12 }
 0x1ae   :  { %vm710_vm0 = vcmp.eq.s32.totalorder %v462_v62, %v2078_v42  ;;  %vm709_vm1 = vcmp.eq.s32.totalorder %v458_v63, %v2078_v42 }
 0x1af   :  { %vm1653_vm2 = vmpackc.low %vm710_vm0, %vm709_vm1 }
 0x1b0   :  { %1874 = vmatpush3.bf16.msk.msra.mxu1 %vm1653_vm2, %v2008_v45 }
 0x1b1   :  { %v387_v0 = vpop.permute.xlu1 %386  ;;  %v383_v1 = vpop.permute.xlu0 %382  ;;  %1875 = vmatprep.subr.bf16.mxu1 %v2006_v12 }
 0x1b2   :  { %vm692_vm4 = vcmp.eq.s32.totalorder %v387_v0, %v2078_v42  ;;  %vm691_vm5 = vcmp.eq.s32.totalorder %v383_v1, %v2078_v42 }
 0x1b3   :  { %vm1639_vm6 = vmpackc.low %vm692_vm4, %vm691_vm5 }
 0x1b4   :  { %1856 = vmatpush3.bf16.msk.msra.mxu0 %vm1639_vm6, %v2008_v45 }
 0x1b5   :  { %v454_v2 = vpop.permute.xlu1 %453  ;;  %v450_v3 = vpop.permute.xlu0 %449  ;;  %1857 = vmatprep.subr.bf16.mxu0 %v2006_v12 }
 0x1b6   :  { %vm708_vm7 = vcmp.eq.s32.totalorder %v454_v2, %v2078_v42  ;;  %vm707_vm8 = vcmp.eq.s32.totalorder %v450_v3, %v2078_v42 }
 0x1b7   :  { %vm1655_vm9 = vmpackc.low %vm708_vm7, %vm707_vm8 }
 0x1b8   :  { %1876 = vmatpush3.bf16.msk.msra.mxu1 %vm1655_vm9, %v2008_v45 }
 0x1b9   :  { %v379_v4 = vpop.permute.xlu1 %378  ;;  %v375_v5 = vpop.permute.xlu0 %374  ;;  %1877 = vmatprep.subr.bf16.mxu1 %v2006_v12 }
 0x1ba   :  { %vm690_vm10 = vcmp.eq.s32.totalorder %v379_v4, %v2078_v42  ;;  %vm689_vm11 = vcmp.eq.s32.totalorder %v375_v5, %v2078_v42 }
 0x1bb   :  { %vm1641_vm12 = vmpackc.low %vm690_vm10, %vm689_vm11 }
 0x1bc   :  { %1858 = vmatpush3.bf16.msk.msra.mxu0 %vm1641_vm12, %v2008_v45 }
 0x1bd   :  { %v446_v6 = vpop.permute.xlu1 %445  ;;  %v442_v7 = vpop.permute.xlu0 %441  ;;  %1859 = vmatprep.subr.bf16.mxu0 %v2006_v12 }
 0x1be   :  { %vm706_vm13 = vcmp.eq.s32.totalorder %v446_v6, %v2078_v42  ;;  %vm705_vm14 = vcmp.eq.s32.totalorder %v442_v7, %v2078_v42 }
 0x1bf   :  { %vm1657_vm15 = vmpackc.low %vm706_vm13, %vm705_vm14 }
 0x1c0   :  { %1878 = vmatpush3.bf16.msk.msra.mxu1 %vm1657_vm15, %v2008_v45 }
 0x1c1   :  { %v371_v8 = vpop.permute.xlu1 %370  ;;  %v367_v9 = vpop.permute.xlu0 %366  ;;  %1879 = vmatprep.subr.bf16.mxu1 %v2006_v12 }
 0x1c2   :  { %vm688_vm0 = vcmp.eq.s32.totalorder %v371_v8, %v2078_v42  ;;  %vm687_vm1 = vcmp.eq.s32.totalorder %v367_v9, %v2078_v42 }
 0x1c3   :  { %vm1643_vm2 = vmpackc.low %vm688_vm0, %vm687_vm1 }
 0x1c4   :  { %1860 = vmatpush3.bf16.msk.msra.mxu0 %vm1643_vm2, %v2008_v45 }
 0x1c5   :  { %v438_v10 = vpop.permute.xlu1 %437  ;;  %v434_v11 = vpop.permute.xlu0 %433  ;;  %1861 = vmatprep.subr.bf16.mxu0 %v2006_v12 }
 0x1c6   :  { %vm704_vm4 = vcmp.eq.s32.totalorder %v438_v10, %v2078_v42  ;;  %vm703_vm5 = vcmp.eq.s32.totalorder %v434_v11, %v2078_v42 }
 0x1c7   :  { %vm1659_vm6 = vmpackc.low %vm704_vm4, %vm703_vm5 }
 0x1c8   :  { %1880 = vmatpush3.bf16.msk.msra.mxu1 %vm1659_vm6, %v2008_v45 }
 0x1c9   :  { %v363_v14 = vpop.permute.xlu1 %362  ;;  %v359_v15 = vpop.permute.xlu0 %358  ;;  %1881 = vmatprep.subr.bf16.mxu1 %v2006_v12 }
 0x1ca   :  { %vm686_vm7 = vcmp.eq.s32.totalorder %v363_v14, %v2078_v42  ;;  %vm685_vm8 = vcmp.eq.s32.totalorder %v359_v15, %v2078_v42 }
 0x1cb   :  { %vm1645_vm9 = vmpackc.low %vm686_vm7, %vm685_vm8 }
 0x1cc   :  { %1862 = vmatpush3.bf16.msk.msra.mxu0 %vm1645_vm9, %v2008_v45 }
 0x1cd   :  { %v430_v16 = vpop.permute.xlu1 %429  ;;  %v426_v17 = vpop.permute.xlu0 %425  ;;  %1887 = vmatprep.subr.bf16.mxu0 %v2006_v12 }
 0x1ce   :  { %vm702_vm10 = vcmp.eq.s32.totalorder %v430_v16, %v2078_v42  ;;  %vm701_vm11 = vcmp.eq.s32.totalorder %v426_v17, %v2078_v42 }
 0x1cf   :  { %vm1661_vm12 = vmpackc.low %vm702_vm10, %vm701_vm11  ;;  %1864 = vmatmul.mubr.bf16.vlgmr.msra.gmra.mxu0 %v2009_v13 }
 0x1d0   :  { %1882 = vmatpush3.bf16.msk.msra.mxu1 %vm1661_vm12, %v2008_v45  ;;  %1903 = vmatprep.mubr.msk.bf16.mxu0 %vm2007_vm3, %v2006_v12 }
 0x1d1   :  { %v553_v18 = vpop.permute.xlu1 %552  ;;  %v549_v19 = vpop.permute.xlu0 %548  ;;  %1907 = vmatprep.subr.bf16.mxu1 %v2006_v12 }
 0x1d2   :  { %vm732_vm13 = vcmp.eq.s32.totalorder %v553_v18, %v2078_v42  ;;  %vm731_vm14 = vcmp.eq.s32.totalorder %v549_v19, %v2078_v42 }
 0x1d3   :  { %vm1663_vm15 = vmpackc.low %vm732_vm13, %vm731_vm14  ;;  %1884 = vmatmul.mubr.bf16.vlgmr.msra.gmra.mxu1 %v2009_v13 }
 0x1d4   :  { %1888 = vmatpush3.bf16.msk.msra.mxu0 %vm1663_vm15, %v2008_v45  ;;  %1923 = vmatprep.mubr.msk.bf16.mxu1 %vm2007_vm3, %v2006_v12 }
 0x1d5   :  { %v620_v20 = vpop.permute.xlu1 %619  ;;  %v616_v21 = vpop.permute.xlu0 %615  ;;  %1889 = vmatprep.subr.bf16.mxu0 %v2006_v12 }
 0x1d6   :  { %vm748_vm0 = vcmp.eq.s32.totalorder %v620_v20, %v2078_v42  ;;  %vm747_vm1 = vcmp.eq.s32.totalorder %v616_v21, %v2078_v42 }
 0x1d7   :  { %vm1679_vm2 = vmpackc.low %vm748_vm0, %vm747_vm1 }
 0x1d8   :  { %1908 = vmatpush3.bf16.msk.msra.mxu1 %vm1679_vm2, %v2008_v45 }
 0x1d9   :  { %v545_v22 = vpop.permute.xlu1 %544  ;;  %v541_v23 = vpop.permute.xlu0 %540  ;;  %1909 = vmatprep.subr.bf16.mxu1 %v2006_v12 }
 0x1da   :  { %vm730_vm4 = vcmp.eq.s32.totalorder %v545_v22, %v2078_v42  ;;  %vm729_vm5 = vcmp.eq.s32.totalorder %v541_v23, %v2078_v42 }
 0x1db   :  { %vm1665_vm3 = vmpackc.low %vm730_vm4, %vm729_vm5 }
 0x1dc   :  { %1890 = vmatpush3.bf16.msk.msra.mxu0 %vm1665_vm3, %v2008_v45 }
 0x1dd   :  { %v612_v24 = vpop.permute.xlu1 %611  ;;  %v608_v25 = vpop.permute.xlu0 %607  ;;  %1891 = vmatprep.subr.bf16.mxu0 %v2006_v12 }
 0x1de   :  { %vm746_vm6 = vcmp.eq.s32.totalorder %v612_v24, %v2078_v42  ;;  %vm745_vm7 = vcmp.eq.s32.totalorder %v608_v25, %v2078_v42 }
 0x1df   :  { %vm1681_vm8 = vmpackc.low %vm746_vm6, %vm745_vm7 }
 0x1e0   :  { %1910 = vmatpush3.bf16.msk.msra.mxu1 %vm1681_vm8, %v2008_v45 }
 0x1e1   :  { %v537_v26 = vpop.permute.xlu1 %536  ;;  %v533_v27 = vpop.permute.xlu0 %532  ;;  %1911 = vmatprep.subr.bf16.mxu1 %v2006_v12 }
 0x1e2   :  { %vm728_vm9 = vcmp.eq.s32.totalorder %v537_v26, %v2078_v42  ;;  %vm727_vm10 = vcmp.eq.s32.totalorder %v533_v27, %v2078_v42 }
 0x1e3   :  { %vm1667_vm11 = vmpackc.low %vm728_vm9, %vm727_vm10 }
 0x1e4   :  { %1892 = vmatpush3.bf16.msk.msra.mxu0 %vm1667_vm11, %v2008_v45 }
 0x1e5   :  { %v604_v28 = vpop.permute.xlu1 %603  ;;  %v600_v29 = vpop.permute.xlu0 %599  ;;  %1893 = vmatprep.subr.bf16.mxu0 %v2006_v12 }
 0x1e6   :  { %vm744_vm12 = vcmp.eq.s32.totalorder %v604_v28, %v2078_v42  ;;  %vm743_vm13 = vcmp.eq.s32.totalorder %v600_v29, %v2078_v42 }
 0x1e7   :  { %vm1683_vm14 = vmpackc.low %vm744_vm12, %vm743_vm13 }
 0x1e8   :  { %1912 = vmatpush3.bf16.msk.msra.mxu1 %vm1683_vm14, %v2008_v45 }
 0x1e9   :  { %v529_v30 = vpop.permute.xlu1 %528  ;;  %v525_v31 = vpop.permute.xlu0 %524  ;;  %1913 = vmatprep.subr.bf16.mxu1 %v2006_v12 }
 0x1ea   :  { %vm726_vm15 = vcmp.eq.s32.totalorder %v529_v30, %v2078_v42  ;;  %vm725_vm0 = vcmp.eq.s32.totalorder %v525_v31, %v2078_v42 }
 0x1eb   :  { %vm1669_vm1 = vmpackc.low %vm726_vm15, %vm725_vm0 }
 0x1ec   :  { %1894 = vmatpush3.bf16.msk.msra.mxu0 %vm1669_vm1, %v2008_v45 }
 0x1ed   :  { %v596_v32 = vpop.permute.xlu1 %595  ;;  %v592_v33 = vpop.permute.xlu0 %591  ;;  %1895 = vmatprep.subr.bf16.mxu0 %v2006_v12 }
 0x1ee   :  { %vm742_vm2 = vcmp.eq.s32.totalorder %v596_v32, %v2078_v42  ;;  %vm741_vm4 = vcmp.eq.s32.totalorder %v592_v33, %v2078_v42 }
 0x1ef   :  { %vm1685_vm5 = vmpackc.low %vm742_vm2, %vm741_vm4 }
 0x1f0   :  { %1914 = vmatpush3.bf16.msk.msra.mxu1 %vm1685_vm5, %v2008_v45 }
 0x1f1   :  { %v521_v34 = vpop.permute.xlu1 %520  ;;  %v517_v35 = vpop.permute.xlu0 %516  ;;  %1915 = vmatprep.subr.bf16.mxu1 %v2006_v12 }
 0x1f2   :  { %vm724_vm3 = vcmp.eq.s32.totalorder %v521_v34, %v2078_v42  ;;  %vm723_vm6 = vcmp.eq.s32.totalorder %v517_v35, %v2078_v42 }
 0x1f3   :  { %vm1671_vm7 = vmpackc.low %vm724_vm3, %vm723_vm6 }
 0x1f4   :  { %1896 = vmatpush3.bf16.msk.msra.mxu0 %vm1671_vm7, %v2008_v45 }
 0x1f5   :  { %v588_v36 = vpop.permute.xlu1 %587  ;;  %v584_v37 = vpop.permute.xlu0 %583  ;;  %1897 = vmatprep.subr.bf16.mxu0 %v2006_v12 }
 0x1f6   :  { %vm740_vm8 = vcmp.eq.s32.totalorder %v588_v36, %v2078_v42  ;;  %vm739_vm9 = vcmp.eq.s32.totalorder %v584_v37, %v2078_v42 }
 0x1f7   :  { %vm1687_vm10 = vmpackc.low %vm740_vm8, %vm739_vm9 }
 0x1f8   :  { %1916 = vmatpush3.bf16.msk.msra.mxu1 %vm1687_vm10, %v2008_v45 }
 0x1f9   :  { %v513_v38 = vpop.permute.xlu1 %512  ;;  %v509_v41 = vpop.permute.xlu0 %508  ;;  %1917 = vmatprep.subr.bf16.mxu1 %v2006_v12 }
 0x1fa   :  { %vm722_vm11 = vcmp.eq.s32.totalorder %v513_v38, %v2078_v42  ;;  %vm721_vm12 = vcmp.eq.s32.totalorder %v509_v41, %v2078_v42 }
 0x1fb   :  { %vm1673_vm13 = vmpackc.low %vm722_vm11, %vm721_vm12 }
 0x1fc   :  { %1898 = vmatpush3.bf16.msk.msra.mxu0 %vm1673_vm13, %v2008_v45  ;;  %vm1399_vm13 = vcmask 1041409  }
 0x1fd   :  { %v580_v43 = vpop.permute.xlu1 %579  ;;  %v576_v44 = vpop.permute.xlu0 %575  ;;  %1899 = vmatprep.subr.bf16.mxu0 %v2006_v12 }
 0x1fe   :  { %vm738_vm14 = vcmp.eq.s32.totalorder %v580_v43, %v2078_v42  ;;  %vm737_vm15 = vcmp.eq.s32.totalorder %v576_v44, %v2078_v42 }
 0x1ff   :  { %vm1689_vm0 = vmpackc.low %vm738_vm14, %vm737_vm15  ;;  %vm1402_vm14 = vcmask 1042434   ;;  %vm1405_vm15 = vcmask 1043459  }
 0x200   :  { %1918 = vmatpush3.bf16.msk.msra.mxu1 %vm1689_vm0, %v2008_v45  ;;  %vm1408_vm0 = vcmask 1044484  }
 0x201   :  { %v505_v46 = vpop.permute.xlu1 %504  ;;  %v501_v47 = vpop.permute.xlu0 %500  ;;  %1919 = vmatprep.subr.bf16.mxu1 %v2006_v12 }
 0x202   :  { %vm720_vm1 = vcmp.eq.s32.totalorder %v505_v46, %v2078_v42  ;;  %vm719_vm2 = vcmp.eq.s32.totalorder %v501_v47, %v2078_v42 }
 0x203   :  { %vm1675_vm4 = vmpackc.low %vm720_vm1, %vm719_vm2  ;;  %vm1411_vm1 = vcmask 1045509   ;;  %vm1414_vm2 = vcmask 1046534  }
 0x204   :  { %1900 = vmatpush3.bf16.msk.msra.mxu0 %vm1675_vm4, %v2008_v45  ;;  %vm1417_vm4 = vcmask 1047559  }
 0x205   :  { %v572_v48 = vpop.permute.xlu1 %571  ;;  %v568_v49 = vpop.permute.xlu0 %567  ;;  %1901 = vmatprep.subr.bf16.mxu0 %v2006_v12 }
 0x206   :  { %vm736_vm5 = vcmp.eq.s32.totalorder %v572_v48, %v2078_v42  ;;  %vm735_vm3 = vcmp.eq.s32.totalorder %v568_v49, %v2078_v42 }
 0x207   :  { %vm1691_vm6 = vmpackc.low %vm736_vm5, %vm735_vm3 }
 0x208   :  { %1920 = vmatpush3.bf16.msk.msra.mxu1 %vm1691_vm6, %v2008_v45 }
 0x209   :  { %v497_v50 = vpop.permute.xlu1 %496  ;;  %v493_v51 = vpop.permute.xlu0 %492  ;;  %1921 = vmatprep.subr.bf16.mxu1 %v2006_v12 }
 0x20a   :  { %vm718_vm7 = vcmp.eq.s32.totalorder %v497_v50, %v2078_v42  ;;  %vm717_vm8 = vcmp.eq.s32.totalorder %v493_v51, %v2078_v42 }
 0x20b   :  { %vm1677_vm9 = vmpackc.low %vm718_vm7, %vm717_vm8 }
 0x20c   :  { %1902 = vmatpush3.bf16.msk.msra.mxu0 %vm1677_vm9, %v2008_v45 }
 0x20d   :  { %v564_v52 = vpop.permute.xlu1 %563  ;;  %v560_v53 = vpop.permute.xlu0 %559 }
 0x20e   :  { %vm734_vm10 = vcmp.eq.s32.totalorder %v564_v52, %v2078_v42  ;;  %vm733_vm11 = vcmp.eq.s32.totalorder %v560_v53, %v2078_v42 }
 0x20f   :  { %vm1693_vm12 = vmpackc.low %vm734_vm10, %vm733_vm11  ;;  %1904 = vmatmul.mubr.bf16.vlgmr.msra.gmra.mxu0 %v2009_v13 }
 0x210   :  { %1922 = vmatpush3.bf16.msk.msra.mxu1 %vm1693_vm12, %v2008_v45  ;;  %v1103_v54 = vpop.f32.mrf.mxu0 }
 0x212   :  { %v1785_v12 = vpop.f32.mrf.mxu0 }
 0x213   :  { %1924 = vmatmul.mubr.bf16.vlgmr.msra.gmra.mxu1 %v2009_v13 }
 0x214   :  { %v1143_v55 = vpop.f32.mrf.mxu1  ;;  %v1106_v56 = vpop.f32.mrf.mxu0 }
 0x215   :  { %v1398_v57 = vrot.slane %v1143_v55, 7 }
 0x216   :  { %v1805_v39 = vpop.f32.mrf.mxu1  ;;  %v1786_v58 = vpop.f32.mrf.mxu0 }
 0x217   :  { %v1400_v40 = vsel %vm1399_vm13, %v1398_v57, %v1103_v54 }
 0x218   :  { %v1146_v59 = vpop.f32.mrf.mxu1 }
 0x21a   :  { %v1806_v60 = vpop.f32.mrf.mxu1 }
 0x250   :  { %v1183_v61 = vpop.f32.mrf.mxu0 }
 0x251   :  { %v1401_v42 = vrot.slane %v1183_v61, 6 }
 0x252   :  { %v1825_v62 = vpop.f32.mrf.mxu0 }
 0x253   :  { %v1403_v63 = vsel %vm1402_vm14, %v1401_v42, %v1400_v40 }
 0x254   :  { %v1223_v0 = vpop.f32.mrf.mxu1  ;;  %v1186_v45 = vpop.f32.mrf.mxu0 }
 0x255   :  { %v1404_v1 = vrot.slane %v1223_v0, 5 }
 0x256   :  { %v1826_v2 = vpop.f32.mrf.mxu0  ;;  %v1845_v13 = vpop.f32.mrf.mxu1 }
 0x257   :  { %v1406_v3 = vsel %vm1405_vm15, %v1404_v1, %v1403_v63 }
 0x258   :  { %v1226_v4 = vpop.f32.mrf.mxu1 }
 0x25a   :  { %v1846_v5 = vpop.f32.mrf.mxu1 }
 0x28f   :  { %v1263_v6 = vpop.f32.mrf.mxu0 }
 0x290   :  { %v1407_v7 = vrot.slane %v1263_v6, 4 }
 0x291   :  { %v1865_v8 = vpop.f32.mrf.mxu0 }
 0x292   :  { %v1409_v9 = vsel %vm1408_vm0, %v1407_v7, %v1406_v3 }
 0x293   :  { %v1303_v10 = vpop.f32.mrf.mxu1  ;;  %v1266_v11 = vpop.f32.mrf.mxu0 }
 0x294   :  { %v1410_v19 = vrot.slane %v1303_v10, 3 }
 0x295   :  { %v1885_v14 = vpop.f32.mrf.mxu1  ;;  %v1866_v15 = vpop.f32.mrf.mxu0 }
 0x296   :  { %v1412_v24 = vsel %vm1411_vm1, %v1410_v19, %v1409_v9 }
 0x297   :  { %v1306_v16 = vpop.f32.mrf.mxu1 }
 0x299   :  { %v1886_v17 = vpop.f32.mrf.mxu1 }
 0x2cf   :  { %v1343_v18 = vpop.f32.mrf.mxu0 }
 0x2d0   :  { %v1413_v20 = vrot.slane %v1343_v18, 2 }
 0x2d1   :  { %v1905_v21 = vpop.f32.mrf.mxu0 }
 0x2d2   :  { %v1415_v26 = vsel %vm1414_vm2, %v1413_v20, %v1412_v24 }
 0x2d3   :  { %v1346_v22 = vpop.f32.mrf.mxu0  ;;  %v1383_v23 = vpop.f32.mrf.mxu1 }
 0x2d4   :  { %v1416_v25 = vrot.slane %v1383_v23, 1 }
 0x2d5   :  { %v1906_v27 = vpop.f32.mrf.mxu0  ;;  %v1925_v28 = vpop.f32.mrf.mxu1 }
 0x2d6   :  { %v1418_v29 = vsel %vm1417_vm4, %v1416_v25, %v1415_v26 }
 0x2d7   :  { %v1386_v30 = vpop.f32.mrf.mxu1  ;;  %1421 = vst [vmem:[#allocation8] sm:$0xff] %v1418_v29 }
 0x2d9   :  { %v1926_v31 = vpop.f32.mrf.mxu1 }
 0x2da   :  { %1987 = shalt.err (!%p1984_p0)
}
 0x2db   :  { %1431 = dma.vmem_to_hbm [thread:$0]  %s1429_s20, 128, %s2431_s2, [#allocation5]  }
 0x2dc   :  { %2000 = dma.done.wait [#allocation5], 128  }
 0x2dd   :  { %2001 = vsyncadd [#allocation5], 4294967168 }
 0x2de   :  { %1435 = vsyncpa [#allocation4], 1 }
 0x2df   :  { %1436 = vsyncpa [#allocation7], 1 }
 0x2e0   :  { %1437 = vsyncpa [#allocation5], 1 }

</bundles_post_ra>
